<compile_context>
chip_gen: v5e
topology: v5e:2x2
jax: 0.10.0
libtpu: 0.0.40
codegen_flags: <defaults>
</compile_context>

<pallas_src>
import functools

import jax
import jax.numpy as jnp
from jax import lax
from jax.experimental import pallas as pl
from jax.experimental.pallas import tpu as pltpu

EPS = 1e-6
NUM_GROUPS = 32
VMEM_LIMIT = 48 * 1024 * 1024


def _pick_tile(n, cap):
    """Largest multiple-of-8 divisor of n that is <= cap (falls back to n)."""
    t = cap
    while t >= 8:
        if n % t == 0:
            return t
        t -= 8
    return n


# ---------------------------------------------------------------------------
# Pass 1: GroupNorm statistics -> folded per-channel affine (scale, shift)
# ---------------------------------------------------------------------------
def _gn_stats_kernel(x_ref, gamma_ref, beta_ref, gmap_ref,
                     scale_ref, shift_ref, sx_acc, sx2_acc, *, n_per_group):
    s = pl.program_id(1)

    @pl.when(s == 0)
    def _():
        sx_acc[...] = jnp.zeros_like(sx_acc)
        sx2_acc[...] = jnp.zeros_like(sx2_acc)

    x = x_ref[0].astype(jnp.float32)                        # (tS, Cp)
    sx_acc[...] += jnp.sum(x, axis=0, keepdims=True)        # (1, Cp)
    sx2_acc[...] += jnp.sum(x * x, axis=0, keepdims=True)   # (1, Cp)

    @pl.when(s == pl.num_programs(1) - 1)
    def _():
        gmap = gmap_ref[...]                                 # (Cp, G) one-hot
        inv_n = jnp.float32(1.0 / n_per_group)               # compile-time const
        gmean = jnp.dot(sx_acc[...], gmap,
                        preferred_element_type=jnp.float32) * inv_n      # (1, G)
        gmean2 = jnp.dot(sx2_acc[...], gmap,
                         preferred_element_type=jnp.float32) * inv_n     # (1, G)
        gvar = jnp.maximum(gmean2 - gmean * gmean, 0.0)
        grstd = lax.rsqrt(gvar + EPS)                        # (1, G)
        # broadcast group stats back to channels; contract over G (no transpose)
        dn = (((1,), (1,)), ((), ()))
        mean_c = lax.dot_general(gmean, gmap, dn,
                                 preferred_element_type=jnp.float32)     # (1, Cp)
        rstd_c = lax.dot_general(grstd, gmap, dn,
                                 preferred_element_type=jnp.float32)     # (1, Cp)
        scale = gamma_ref[...] * rstd_c
        shift = beta_ref[...] - mean_c * scale
        scale_ref[0] = scale
        shift_ref[0] = shift


# ---------------------------------------------------------------------------
# Pass 2: apply GroupNorm affine + fused QKV 1x1 conv (single matmul)
# ---------------------------------------------------------------------------
def _gn_qkv_kernel(x_ref, scale_ref, shift_ref, wqkv_ref, bqkv_ref, qkv_ref):
    x = x_ref[0].astype(jnp.float32)                         # (tS, Cp)
    h = x * scale_ref[0] + shift_ref[0]                      # (tS, Cp)
    qkv = jnp.dot(h.astype(jnp.bfloat16), wqkv_ref[...],     # bf16 MXU, f32 acc
                  preferred_element_type=jnp.float32)        # (tS, 3Cp)
    qkv_ref[0] = qkv + bqkv_ref[...]


# ---------------------------------------------------------------------------
# Pass 3: flash attention over spatial positions + residual
# ---------------------------------------------------------------------------
def _flash_attn_kernel(x_ref, q_ref, k_ref, v_ref, o_ref, m_sc, l_sc, acc_sc):
    j = pl.program_id(2)

    @pl.when(j == 0)
    def _():
        m_sc[...] = jnp.full_like(m_sc, -jnp.inf)
        l_sc[...] = jnp.zeros_like(l_sc)
        acc_sc[...] = jnp.zeros_like(acc_sc)

    q = q_ref[0].astype(jnp.bfloat16)                        # (tq, Cp), scale pre-folded
    k = k_ref[0].astype(jnp.bfloat16)                        # (tk, Cp)
    dn = (((1,), (1,)), ((), ()))                            # contract channel dim
    s = lax.dot_general(q, k, dn,
                        preferred_element_type=jnp.float32)  # (tq, tk)

    m_prev = m_sc[...]
    m_new = jnp.maximum(m_prev, jnp.max(s, axis=1, keepdims=True))
    alpha = jnp.exp(m_prev - m_new)
    p = jnp.exp(s - m_new)                                   # f32 elementwise softmax
    l_sc[...] = alpha * l_sc[...] + jnp.sum(p, axis=1, keepdims=True)
    acc_sc[...] = alpha * acc_sc[...] + jnp.dot(
        p.astype(jnp.bfloat16), v_ref[0].astype(jnp.bfloat16),
        preferred_element_type=jnp.float32)
    m_sc[...] = m_new

    @pl.when(j == pl.num_programs(2) - 1)
    def _():
        inv_l = pl.reciprocal(l_sc[...], approx=True)
        o_ref[0] = (x_ref[0] + acc_sc[...] * inv_l).astype(o_ref.dtype)


# ---------------------------------------------------------------------------
# Wrapper
# ---------------------------------------------------------------------------
def nonlocal_block(x_nchw, params):
    """x_nchw: (B, C, H, W) float32.  Returns (B, C, H, W)."""
    B, C, H, W = x_nchw.shape
    HW = H * W
    G = NUM_GROUPS
    assert C % G == 0, "GroupNorm(32) requires channels divisible by 32"
    cpg = C // G
    attn_scale = float(C) ** (-0.5)

    Cp = ((C + 127) // 128) * 128                 # lane-pad channels to 128k
    pad_c = Cp - C

    # NCHW -> (B, HW, Cp): spatial on sublanes, channels on lanes.
    # TODO(synk): for very small HW this transpose pair is an extra HBM
    # round-trip; could be fused into the kernel DMA with a channel-major view.
    x = jnp.transpose(x_nchw.reshape(B, C, HW), (0, 2, 1)).astype(jnp.float32)
    if pad_c:
        x = jnp.pad(x, ((0, 0), (0, 0), (0, pad_c)))

    gamma = jnp.pad(params["gamma"].astype(jnp.float32), (0, pad_c)).reshape(1, Cp)
    beta = jnp.pad(params["beta"].astype(jnp.float32), (0, pad_c)).reshape(1, Cp)

    # channel -> group one-hot map; padded channels map to no group.
    ch = jnp.arange(Cp)
    gmap = jnp.where(
        (ch[:, None] < C) & (ch[:, None] // cpg == jnp.arange(G)[None, :]),
        1.0, 0.0).astype(jnp.float32)                        # (Cp, G)

    # Pre-transpose, pad, fuse QKV weights; fold the softmax scale into q.
    def pad_wt(w, s=1.0):
        wt = jnp.asarray(w, jnp.float32).T * s               # (C_in, C_out)
        return jnp.pad(wt, ((0, pad_c), (0, pad_c)))

    wqkv = jnp.concatenate(
        [pad_wt(params["wq"], attn_scale), pad_wt(params["wk"]),
         pad_wt(params["wv"])], axis=1).astype(jnp.bfloat16)  # (Cp, 3Cp) bf16

    def pad_b(b, s=1.0):
        return jnp.pad(jnp.asarray(b, jnp.float32) * s, (0, pad_c))

    bqkv = jnp.concatenate(
        [pad_b(params["bq"], attn_scale), pad_b(params["bk"]),
         pad_b(params["bv"])]).reshape(1, 3 * Cp)

    t_s = _pick_tile(HW, 512)
    t_q = _pick_tile(HW, 256)
    t_k = _pick_tile(HW, 512)
    n_s, n_q, n_k = HW // t_s, HW // t_q, HW // t_k

    # ---- pass 1: GroupNorm stats -> folded affine -------------------------
    stats_kernel = functools.partial(_gn_stats_kernel,
                                     n_per_group=float(cpg * HW))
    scale_c, shift_c = pl.pallas_call(
        stats_kernel,
        out_shape=(jax.ShapeDtypeStruct((B, 1, Cp), jnp.float32),
                   jax.ShapeDtypeStruct((B, 1, Cp), jnp.float32)),
        grid_spec=pltpu.PrefetchScalarGridSpec(
            num_scalar_prefetch=0,
            grid=(B, n_s),
            in_specs=[
                pl.BlockSpec((1, t_s, Cp), lambda b, s: (b, s, 0)),   # x
                pl.BlockSpec((1, Cp), lambda b, s: (0, 0)),           # gamma
                pl.BlockSpec((1, Cp), lambda b, s: (0, 0)),           # beta
                pl.BlockSpec((Cp, G), lambda b, s: (0, 0)),           # group map
            ],
            out_specs=(pl.BlockSpec((1, 1, Cp), lambda b, s: (b, 0, 0)),
                       pl.BlockSpec((1, 1, Cp), lambda b, s: (b, 0, 0))),
            scratch_shapes=[pltpu.VMEM((1, Cp), jnp.float32),
                            pltpu.VMEM((1, Cp), jnp.float32)],
        ),
        compiler_params=pltpu.CompilerParams(
            dimension_semantics=("parallel", "arbitrary"),
            vmem_limit_bytes=VMEM_LIMIT),
    )(x, gamma, beta, gmap)

    # ---- pass 2: GN apply + fused QKV projection --------------------------
    qkv = pl.pallas_call(
        _gn_qkv_kernel,
        out_shape=jax.ShapeDtypeStruct((B, HW, 3 * Cp), jnp.float32),
        grid_spec=pltpu.PrefetchScalarGridSpec(
            num_scalar_prefetch=0,
            grid=(B, n_s),
            in_specs=[
                pl.BlockSpec((1, t_s, Cp), lambda b, s: (b, s, 0)),   # x
                pl.BlockSpec((1, 1, Cp), lambda b, s: (b, 0, 0)),     # scale_c
                pl.BlockSpec((1, 1, Cp), lambda b, s: (b, 0, 0)),     # shift_c
                pl.BlockSpec((Cp, 3 * Cp), lambda b, s: (0, 0)),      # Wqkv (bf16)
                pl.BlockSpec((1, 3 * Cp), lambda b, s: (0, 0)),       # bqkv
            ],
            out_specs=pl.BlockSpec((1, t_s, 3 * Cp), lambda b, s: (b, s, 0)),
        ),
        compiler_params=pltpu.CompilerParams(
            dimension_semantics=("parallel", "parallel"),
            vmem_limit_bytes=VMEM_LIMIT),
    )(x, scale_c, shift_c, wqkv, bqkv)

    # ---- pass 3: flash attention + residual --------------------------------
    # The same qkv array is passed three times with different block offsets
    # along the last axis (0 -> q, 1 -> k, 2 -> v).
    out = pl.pallas_call(
        _flash_attn_kernel,
        out_shape=jax.ShapeDtypeStruct((B, HW, Cp), jnp.float32),
        grid_spec=pltpu.PrefetchScalarGridSpec(
            num_scalar_prefetch=0,
            grid=(B, n_q, n_k),
            in_specs=[
                pl.BlockSpec((1, t_q, Cp), lambda b, i, j: (b, i, 0)),  # x (residual)
                pl.BlockSpec((1, t_q, Cp), lambda b, i, j: (b, i, 0)),  # q slab
                pl.BlockSpec((1, t_k, Cp), lambda b, i, j: (b, j, 1)),  # k slab
                pl.BlockSpec((1, t_k, Cp), lambda b, i, j: (b, j, 2)),  # v slab
            ],
            out_specs=pl.BlockSpec((1, t_q, Cp), lambda b, i, j: (b, i, 0)),
            scratch_shapes=[pltpu.VMEM((t_q, 1), jnp.float32),    # running max
                            pltpu.VMEM((t_q, 1), jnp.float32),    # running sum
                            pltpu.VMEM((t_q, Cp), jnp.float32)],  # accumulator
        ),
        compiler_params=pltpu.CompilerParams(
            dimension_semantics=("parallel", "parallel", "arbitrary"),
            vmem_limit_bytes=VMEM_LIMIT),
    )(x, qkv, qkv, qkv)

    out = out[:, :, :C]                                      # drop lane padding
    return jnp.transpose(out, (0, 2, 1)).reshape(B, C, H, W)


# ---------------------------------------------------------------------------
# Pure-JAX reference mirror of the PyTorch forward (NCHW)
# ---------------------------------------------------------------------------
def reference_forward(x, params):
    B, C, H, W = x.shape
    G = NUM_GROUPS
    xg = x.reshape(B, G, C // G, H, W)
    mean = jnp.mean(xg, axis=(2, 3, 4), keepdims=True)
    var = jnp.mean((xg - mean) ** 2, axis=(2, 3, 4), keepdims=True)
    h = ((xg - mean) / jnp.sqrt(var + EPS)).reshape(B, C, H, W)
    h = h * params["gamma"][None, :, None, None] + params["beta"][None, :, None, None]
    hf = h.reshape(B, C, H * W)
    q = jnp.einsum("oc,bcs->bos", params["wq"], hf) + params["bq"][None, :, None]
    k = jnp.einsum("oc,bcs->bos", params["wk"], hf) + params["bk"][None, :, None]
    v = jnp.einsum("oc,bcs->bos", params["wv"], hf) + params["bv"][None, :, None]
    qt = jnp.transpose(q, (0, 2, 1))                    # (B, HW, C)
    attn = jnp.einsum("bic,bcj->bij", qt, k) * (int(C) ** (-0.5))
    attn = jax.nn.softmax(attn, axis=2)
    a = jnp.einsum("bcj,bij->bci", v, attn)             # == bmm(v, attn.T)
    return x + a.reshape(B, C, H, W)


if __name__ == "__main__":
    B, C, H, W = 2, 32, 8, 8   # C must be a multiple of 32 for GroupNorm(32)
    key = jax.random.PRNGKey(0)
    keys = jax.random.split(key, 10)

    x = jax.random.normal(keys[0], (B, C, H, W), dtype=jnp.float32)
    params = {
        "gamma": 1.0 + 0.1 * jax.random.normal(keys[1], (C,), dtype=jnp.float32),
        "beta": 0.1 * jax.random.normal(keys[2], (C,), dtype=jnp.float32),
        "wq": 0.1 * jax.random.normal(keys[3], (C, C), dtype=jnp.float32),
        "bq": 0.01 * jax.random.normal(keys[4], (C,), dtype=jnp.float32),
        "wk": 0.1 * jax.random.normal(keys[5], (C, C), dtype=jnp.float32),
        "bk": 0.01 * jax.random.normal(keys[6], (C,), dtype=jnp.float32),
        "wv": 0.1 * jax.random.normal(keys[7], (C, C), dtype=jnp.float32),
        "bv": 0.01 * jax.random.normal(keys[8], (C,), dtype=jnp.float32),
        # proj_out exists in __init__ but is never applied in forward(); omitted.
    }

    out = nonlocal_block(x, params)
    out = jax.block_until_ready(out)

    ref = reference_forward(x, params)
    assert out.shape == (B, C, H, W)
    # bf16 MXU operands + approx reciprocal => slightly looser tolerance vs f32 ref
    assert jnp.allclose(out, ref, atol=2e-2, rtol=2e-2), (
        float(jnp.max(jnp.abs(out - ref))))

    print("KERNEL_OK")
</pallas_src>

<mosaic_0001>
module attributes {stable_mosaic.version = 11 : i64} {
  func.func @_gn_stats_kernel(%arg0: i32, %arg1: i32, %arg2: memref<1x64x128xf32, #tpu.memory_space<vmem>>, %arg3: memref<1x128xf32, #tpu.memory_space<vmem>>, %arg4: memref<1x128xf32, #tpu.memory_space<vmem>>, %arg5: memref<128x32xf32, #tpu.memory_space<vmem>>, %arg6: memref<1x1x128xf32, #tpu.memory_space<vmem>>, %arg7: memref<1x1x128xf32, #tpu.memory_space<vmem>>, %arg8: memref<1x128xf32, #tpu.memory_space<vmem>>, %arg9: memref<1x128xf32, #tpu.memory_space<vmem>>) attributes {dimension_semantics = [#tpu.dimension_semantics<parallel>, #tpu.dimension_semantics<arbitrary>], iteration_bounds = array<i64: 2, 1>, scalar_prefetch = 0 : i64, scratch_operands = 2 : i64, tpu.core_type = #tpu.core_type<tc>, window_params = [{transform_indices = @transform_0, window_bounds = array<i64: 1, 64, 128>}, {pipeline_mode = #tpu.pipeline_mode<synchronous>, transform_indices = @transform_1, window_bounds = array<i64: 1, 128>}, {pipeline_mode = #tpu.pipeline_mode<synchronous>, transform_indices = @transform_2, window_bounds = array<i64: 1, 128>}, {pipeline_mode = #tpu.pipeline_mode<synchronous>, transform_indices = @transform_3, window_bounds = array<i64: 128, 32>}, {transform_indices = @transform_4, window_bounds = array<i64: 1, 1, 128>}, {transform_indices = @transform_5, window_bounds = array<i64: 1, 1, 128>}]} {
    %c0_i32 = arith.constant 0 : i32
    %0 = arith.cmpi eq, %arg1, %c0_i32 : i32
    %1 = arith.extui %0 : i1 to i32
    %c0_i32_0 = arith.constant 0 : i32
    %2 = arith.cmpi ne, %1, %c0_i32_0 : i32
    scf.if %2 {
      %cst_14 = arith.constant 0.000000e+00 : f32
      %19 = vector.broadcast %cst_14 : f32 to vector<1x128xf32>
      %c0_15 = arith.constant 0 : index
      %c0_16 = arith.constant 0 : index
      %20 = vector.load %arg8[%c0_15, %c0_16] : memref<1x128xf32, #tpu.memory_space<vmem>>, vector<1x128xf32>
      tpu.vector_store %arg8[%c0_15, %c0_16], %19 {strides = array<i32>} : memref<1x128xf32, #tpu.memory_space<vmem>>, vector<1x128xf32>,
      %cst_17 = arith.constant 0.000000e+00 : f32
      %21 = vector.broadcast %cst_17 : f32 to vector<1x128xf32>
      %c0_18 = arith.constant 0 : index
      %c0_19 = arith.constant 0 : index
      %22 = vector.load %arg9[%c0_18, %c0_19] : memref<1x128xf32, #tpu.memory_space<vmem>>, vector<1x128xf32>
      tpu.vector_store %arg9[%c0_18, %c0_19], %21 {strides = array<i32>} : memref<1x128xf32, #tpu.memory_space<vmem>>, vector<1x128xf32>,
    } else {
    }
    %c0 = arith.constant 0 : index
    %c0_1 = arith.constant 0 : index
    %c0_2 = arith.constant 0 : index
    %3 = vector.load %arg2[%c0, %c0_1, %c0_2] : memref<1x64x128xf32, #tpu.memory_space<vmem>>, vector<1x64x128xf32>
    %4 = vector.shape_cast %3 : vector<1x64x128xf32> to vector<64x128xf32>
    %c0_3 = arith.constant 0 : index
    %c0_4 = arith.constant 0 : index
    %5 = vector.load %arg8[%c0_3, %c0_4] : memref<1x128xf32, #tpu.memory_space<vmem>>, vector<1x128xf32>
    %cst = arith.constant dense<0.000000e+00> : vector<128xf32>
    %6 = vector.multi_reduction <add>, %4, %cst [0] : vector<64x128xf32> to vector<128xf32>
    %7 = vector.shape_cast %6 : vector<128xf32> to vector<1x128xf32>
    %8 = arith.addf %5, %7 : vector<1x128xf32>
    %c0_5 = arith.constant 0 : index
    %c0_6 = arith.constant 0 : index
    %9 = vector.load %arg8[%c0_5, %c0_6] : memref<1x128xf32, #tpu.memory_space<vmem>>, vector<1x128xf32>
    tpu.vector_store %arg8[%c0_5, %c0_6], %8 {strides = array<i32>} : memref<1x128xf32, #tpu.memory_space<vmem>>, vector<1x128xf32>,
    %c0_7 = arith.constant 0 : index
    %c0_8 = arith.constant 0 : index
    %10 = vector.load %arg9[%c0_7, %c0_8] : memref<1x128xf32, #tpu.memory_space<vmem>>, vector<1x128xf32>
    %11 = arith.mulf %4, %4 : vector<64x128xf32>
    %cst_9 = arith.constant dense<0.000000e+00> : vector<128xf32>
    %12 = vector.multi_reduction <add>, %11, %cst_9 [0] : vector<64x128xf32> to vector<128xf32>
    %13 = vector.shape_cast %12 : vector<128xf32> to vector<1x128xf32>
    %14 = arith.addf %10, %13 : vector<1x128xf32>
    %c0_10 = arith.constant 0 : index
    %c0_11 = arith.constant 0 : index
    %15 = vector.load %arg9[%c0_10, %c0_11] : memref<1x128xf32, #tpu.memory_space<vmem>>, vector<1x128xf32>
    tpu.vector_store %arg9[%c0_10, %c0_11], %14 {strides = array<i32>} : memref<1x128xf32, #tpu.memory_space<vmem>>, vector<1x128xf32>,
    %c0_i32_12 = arith.constant 0 : i32
    %16 = arith.cmpi eq, %arg1, %c0_i32_12 : i32
    %17 = arith.extui %16 : i1 to i32
    %c0_i32_13 = arith.constant 0 : i32
    %18 = arith.cmpi ne, %17, %c0_i32_13 : i32
    scf.if %18 {
      %c0_14 = arith.constant 0 : index
      %c0_15 = arith.constant 0 : index
      %19 = vector.load %arg5[%c0_14, %c0_15] : memref<128x32xf32, #tpu.memory_space<vmem>>, vector<128x32xf32>
      %c0_16 = arith.constant 0 : index
      %c0_17 = arith.constant 0 : index
      %20 = vector.load %arg8[%c0_16, %c0_17] : memref<1x128xf32, #tpu.memory_space<vmem>>, vector<1x128xf32>
      %cst_18 = arith.constant dense<0.000000e+00> : vector<1x32xf32>
      %21 = tpu.matmul %20, %19, %cst_18 {dimension_numbers = #tpu.dot_dimension_numbers<[1], [0], [0], [1], [0, 0, 1, 1], [], []>} : vector<1x128xf32>, vector<128x32xf32>, vector<1x32xf32> -> vector<1x32xf32>
      %cst_19 = arith.constant 1.562500e-02 : f32
      %22 = vector.broadcast %cst_19 : f32 to vector<1x32xf32>
      %23 = arith.mulf %21, %22 : vector<1x32xf32>
      %c0_20 = arith.constant 0 : index
      %c0_21 = arith.constant 0 : index
      %24 = vector.load %arg9[%c0_20, %c0_21] : memref<1x128xf32, #tpu.memory_space<vmem>>, vector<1x128xf32>
      %cst_22 = arith.constant dense<0.000000e+00> : vector<1x32xf32>
      %25 = tpu.matmul %24, %19, %cst_22 {dimension_numbers = #tpu.dot_dimension_numbers<[1], [0], [0], [1], [0, 0, 1, 1], [], []>} : vector<1x128xf32>, vector<128x32xf32>, vector<1x32xf32> -> vector<1x32xf32>
      %cst_23 = arith.constant 1.562500e-02 : f32
      %26 = vector.broadcast %cst_23 : f32 to vector<1x32xf32>
      %27 = arith.mulf %25, %26 : vector<1x32xf32>
      %28 = arith.mulf %23, %23 : vector<1x32xf32>
      %29 = arith.subf %27, %28 : vector<1x32xf32>
      %cst_24 = arith.constant 0.000000e+00 : f32
      %30 = vector.broadcast %cst_24 : f32 to vector<1x32xf32>
      %31 = arith.maximumf %29, %30 : vector<1x32xf32>
      %cst_25 = arith.constant 9.99999997E-7 : f32
      %32 = vector.broadcast %cst_25 : f32 to vector<1x32xf32>
      %33 = arith.addf %31, %32 : vector<1x32xf32>
      %34 = math.rsqrt %33 : vector<1x32xf32>
      %cst_26 = arith.constant dense<0.000000e+00> : vector<1x128xf32>
      %35 = tpu.matmul %23, %19, %cst_26 {dimension_numbers = #tpu.dot_dimension_numbers<[1], [1], [0], [0], [0, 0, 1, 0], [], []>} : vector<1x32xf32>, vector<128x32xf32>, vector<1x128xf32> -> vector<1x128xf32>
      %cst_27 = arith.constant dense<0.000000e+00> : vector<1x128xf32>
      %36 = tpu.matmul %34, %19, %cst_27 {dimension_numbers = #tpu.dot_dimension_numbers<[1], [1], [0], [0], [0, 0, 1, 0], [], []>} : vector<1x32xf32>, vector<128x32xf32>, vector<1x128xf32> -> vector<1x128xf32>
      %c0_28 = arith.constant 0 : index
      %c0_29 = arith.constant 0 : index
      %37 = vector.load %arg3[%c0_28, %c0_29] : memref<1x128xf32, #tpu.memory_space<vmem>>, vector<1x128xf32>
      %38 = arith.mulf %37, %36 : vector<1x128xf32>
      %c0_30 = arith.constant 0 : index
      %c0_31 = arith.constant 0 : index
      %39 = vector.load %arg4[%c0_30, %c0_31] : memref<1x128xf32, #tpu.memory_space<vmem>>, vector<1x128xf32>
      %40 = arith.mulf %35, %38 : vector<1x128xf32>
      %41 = arith.subf %39, %40 : vector<1x128xf32>
      %c0_32 = arith.constant 0 : index
      %c0_33 = arith.constant 0 : index
      %c0_34 = arith.constant 0 : index
      %42 = vector.load %arg6[%c0_32, %c0_33, %c0_34] : memref<1x1x128xf32, #tpu.memory_space<vmem>>, vector<1x1x128xf32>
      %43 = vector.shape_cast %42 : vector<1x1x128xf32> to vector<1x128xf32>
      %44 = vector.shape_cast %38 : vector<1x128xf32> to vector<1x1x128xf32>
      tpu.vector_store %arg6[%c0_32, %c0_33, %c0_34], %44 {strides = array<i32>} : memref<1x1x128xf32, #tpu.memory_space<vmem>>, vector<1x1x128xf32>,
      %c0_35 = arith.constant 0 : index
      %c0_36 = arith.constant 0 : index
      %c0_37 = arith.constant 0 : index
      %45 = vector.load %arg7[%c0_35, %c0_36, %c0_37] : memref<1x1x128xf32, #tpu.memory_space<vmem>>, vector<1x1x128xf32>
      %46 = vector.shape_cast %45 : vector<1x1x128xf32> to vector<1x128xf32>
      %47 = vector.shape_cast %41 : vector<1x128xf32> to vector<1x1x128xf32>
      tpu.vector_store %arg7[%c0_35, %c0_36, %c0_37], %47 {strides = array<i32>} : memref<1x1x128xf32, #tpu.memory_space<vmem>>, vector<1x1x128xf32>,
    } else {
    }
    return
  }
  func.func @transform_0(%arg0: i32, %arg1: i32) -> (i32, i32, i32) {
    %c0_i32 = arith.constant 0 : i32
    %c0_i32_0 = arith.constant 0 : i32
    return %arg0, %arg1, %c0_i32 : i32, i32, i32
  }
  func.func @transform_1(%arg0: i32, %arg1: i32) -> (i32, i32) {
    %c0_i32 = arith.constant 0 : i32
    %c0_i32_0 = arith.constant 0 : i32
    %c0_i32_1 = arith.constant 0 : i32
    return %c0_i32, %c0_i32_0 : i32, i32
  }
  func.func @transform_2(%arg0: i32, %arg1: i32) -> (i32, i32) {
    %c0_i32 = arith.constant 0 : i32
    %c0_i32_0 = arith.constant 0 : i32
    %c0_i32_1 = arith.constant 0 : i32
    return %c0_i32, %c0_i32_0 : i32, i32
  }
  func.func @transform_3(%arg0: i32, %arg1: i32) -> (i32, i32) {
    %c0_i32 = arith.constant 0 : i32
    %c0_i32_0 = arith.constant 0 : i32
    %c0_i32_1 = arith.constant 0 : i32
    return %c0_i32, %c0_i32_0 : i32, i32
  }
  func.func @transform_4(%arg0: i32, %arg1: i32) -> (i32, i32, i32) {
    %c0_i32 = arith.constant 0 : i32
    %c0_i32_0 = arith.constant 0 : i32
    %c0_i32_1 = arith.constant 0 : i32
    return %arg0, %c0_i32, %c0_i32_0 : i32, i32, i32
  }
  func.func @transform_5(%arg0: i32, %arg1: i32) -> (i32, i32, i32) {
    %c0_i32 = arith.constant 0 : i32
    %c0_i32_0 = arith.constant 0 : i32
    %c0_i32_1 = arith.constant 0 : i32
    return %arg0, %c0_i32, %c0_i32_0 : i32, i32, i32
  }
}

</mosaic_0001>

<bundles_post_ra>
// kernel: tpu_custom_call.1
= control target key start
LH: loop header
LB: loop body
LE: loop exit
PB: predicated region body
PF: predicated region fallthrough
CT: control target
= control target key end

     0   :  { %11 = vsyncpa [#allocation5], 0  ;;  %s1154_s0 = inlined_call_operand.vmem [shape: f32[2,64,128], index: 0, kind: input, shape index: {}]   ;;  %s1155_s1 = inlined_call_operand.vmem [shape: f32[1,128], index: 1, kind: input, shape index: {}]   ;;  %s1156_s2 = inlined_call_operand.vmem [shape: f32[1,128], index: 2, kind: input, shape index: {}]   ;;  %s1157_s3 = inlined_call_operand.vmem [shape: f32[128,32], index: 3, kind: input, shape index: {}]   ;;  %s1158_s4 = inlined_call_operand.hbm [shape: f32[2,1,128], index: 4, kind: output, shape index: {0}]   ;;  %s1159_s5 = inlined_call_operand.hbm [shape: f32[2,1,128], index: 5, kind: output, shape index: {1}]  }
   0x1   :  { %13 = vsyncpa [#allocation5 + $0x1], 0 }
   0x2   :  { %14 = vsyncpa [#allocation7], 0 }
   0x3   :  { %16 = vsyncpa [#allocation7 + $0x1], 0  ;;  %s870_s18 = smov 0   ;;  %s872_s19 = smov 0  }
   0x4   :  { %s874_s20 = smov 0   ;;  %s876_s21 = smov 0  }
   0x5   :  { %s878_s22 = smov 0   ;;  %s880_s23 = smov 0  }
   0x6 LB: > { %s620_s24 = sadd.s32 4294967295, %s837_s23   ;;  %s621_s25 = sadd.s32 4294967294, %s837_s23   ;;  %s837_s23 = sphi %s880_s23, %s22_s23   ;;  %s833_s22 = sphi %s878_s22, %s1166_s22   ;;  %s829_s21 = sphi %s876_s21, %s1165_s21   ;;  %s825_s20 = sphi %s874_s20, %s1164_s20   ;;  %s821_s19 = sphi %s872_s19, %s1163_s19   ;;  %s817_s18 = sphi %s870_s18, %s1162_s18  }
   0x7   : > { %s34_s26 = sadd.s32 1, %s833_s22  ;;  %s132_s27 = sadd.s32 1, %s825_s20 }
   0x8   : > { %p36_p0 = scmp.ge.s32.totalorder %s34_s26, 2  ;;  %p142_p1 = scmp.ne.s32.totalorder %s825_s20, %s821_s19 }
   0x9   : > { %p143_p2 = scmp.eq.s32.totalorder %s620_s24, 1  ;;  %p148_p3 = scmp.ne.s32.totalorder %s821_s19, %s817_s18 }
   0xa   : > { %s1168_s26 = smov (%p36_p0, %s34_s26), 0  ;;  %p149_p5 = scmp.eq.s32.totalorder %s621_s25, 1 }
   0xb   : > { %p910_p4 = por %p143_p2, %p142_p1  ;;  %s129_s29 = ssub.s32 %s833_s22, %s1168_s26 }
   0xc   : > { %p624_p6 = scmp.ge.s32.totalorder %s837_s23, 1  ;;  %p130_p7 = scmp.eq.s32.totalorder %s129_s29, 0 }
   0xd   : > { %p917_p8 = por %p149_p5, %p148_p3  ;;  %p215_p9 = scmp.lt.s32.totalorder %s837_s23, 3 }
   0xe   : > { %s923_s6 = scalar_select %p130_p7, %s825_s20, %s132_s27  }
   0xf   : > { %p216_p10 = pnand %p624_p6, %p215_p9 }
  0x10   : > { %p251_p11 = scmp.lt.s32.totalorder (!%p216_p10), %s829_s21, 1  ;;  %s1083_s14 = sand.u32 (!%p216_p10), 1, %s821_s19  }
  0x11   : > { %219 = sbr.rel (%p216_p10) target bundleno = 366 (0x16e), region = 36  ;;  %s506_s17 = scalar_lea.hbm (!%p216_p10), %s1158_s4, %s829_s21 }
  0x12   : > { %s243_s27 = scalar_lea.vmem (!%p216_p10), [#allocation4], %s1083_s14  ;;  %s510_s7 = sshll.u32 (!%p216_p10), %s506_s17, 4  ;;  %s511_s7 = int_to_ptr.hbm [resolvable:$true] %s510_s7 }
  0x13   : > { %s519_s10 = scalar_lea.hbm (!%p216_p10), %s1159_s5, %s829_s21  ;;  %s494_s17 = scalar_lea.sflag (!%p216_p10), [#allocation5], %s1083_s14 }
  0x14   : > { %s741_s24 = sshra.s32 (!%p216_p10), %s511_s7, 4  ;;  %s747_s9 = scalar_lea.hbm (!%p216_p10), %s1158_s4, 2  ;;  %s742_s24 = int_to_ptr.hbm [resolvable:$true] %s741_s24 }
  0x15   : > { %p748_p1 = scmp.lt.s32.totalorder (!%p216_p10), %s742_s24, %s1158_s4 }
  0x16   : > { %v332_v0 = vld [vmem:[%s1157_s3 + $0x78] sm:$0xff]  ;;  %v931_v1 = vld [vmem:[%s1157_s3 + $0x70] sm:$0xff]  ;;  %v839_v2 = vmov 0.0   ;;  %v937_v3 = vld [vmem:[%s1157_s3 + $0x68] sm:$0xff]  ;;  %s252_s13 = scalar_select %p251_p11, %s829_s21, 1  ;;  %vm391_vm0 = vcmask 261120  }
  0x17   : > { %334 = vmatpush.msra.mxu0 %v332_v0  ;;  %356 = vmatpush.msra.mxu1 %v332_v0  ;;  %264 = vst [vmem:[#allocation2] sm:$0x1] %v839_v2  ;;  %v945_v4 = vld [vmem:[%s1157_s3 + $0x60] sm:$0xff]  ;;  %v952_v5 = vld [vmem:[%s1157_s3 + $0x58] sm:$0xff]  ;;  %v968_v13 = vld [vmem:[%s1157_s3 + $0x50] sm:$0xff]  ;;  %s743_s21 = scalar_lea.hbm %s742_s24, 1 }
  0x18   : > { %265 = vst [vmem:[#allocation3] sm:$0x1] %v839_v2  ;;  %s663_s16 = sshll.u32 %s252_s13, 6  ;;  %v976_v17 = vld [vmem:[%s1157_s3 + $0x48] sm:$0xff]  ;;  %v984_v22 = vld [vmem:[%s1157_s3 + $0x40] sm:$0xff]  ;;  %v992_v27 = vld [vmem:[%s1157_s3 + $0x38] sm:$0xff]  ;;  %627 = vmatpush.xpose.msk.msra.mxu2 %vm391_vm0, %v332_v0  ;;  %644 = vmatpush.xpose.msk.msra.mxu3 %vm391_vm0, %v332_v0  ;;  %p744_p12 = scmp.ne.s32.totalorder %s742_s24, %s743_s21 }
  0x19   : > { %335 = vmatpush.msra.mxu0 %v931_v1  ;;  %357 = vmatpush.msra.mxu1 %v931_v1  ;;  %s957_s29 = scalar_lea.vmem %s1154_s0, %s663_s16  ;;  %v1000_v32 = vld [vmem:[%s1157_s3 + $0x30] sm:$0xff]  ;;  %v1009_v36 = vld [vmem:[%s1157_s3 + $0x28] sm:$0xff]  ;;  %v321_v40 = vld [vmem:[%s1157_s3 + $0x20] sm:$0xff]  ;;  %s249_s13 = scalar_lea.vmem [#allocation6], %s1083_s14 }
  0x1a   : > { %v266_v6 = vld [vmem:[%s957_s29] sm:$0xff]  ;;  %v267_v7 = vld [vmem:[%s957_s29 + $0x8] sm:$0xff]  ;;  %v268_v8 = vld [vmem:[%s957_s29 + $0x10] sm:$0xff]  ;;  %s1104_s15 = sshll.u32 %s249_s13, 4  ;;  %s1106_s16 = sshll.u32 %s519_s10, 4  ;;  %s522_s15 = int_to_ptr.vmem [resolvable:$true] %s1104_s15  ;;  %s524_s16 = int_to_ptr.hbm [resolvable:$true] %s1106_s16 }
  0x1b   : > { %336 = vmatpush.msra.mxu0 %v937_v3  ;;  %358 = vmatpush.msra.mxu1 %v937_v3  ;;  %v269_v9 = vld [vmem:[%s957_s29 + $0x18] sm:$0xff]  ;;  %v275_v10 = vadd.f32 %v267_v7, %v266_v6  ;;  %v291_v11 = vmul.f32 %v266_v6, %v266_v6  ;;  %v292_v12 = vmul.f32 %v267_v7, %v267_v7  ;;  %v270_v15 = vld [vmem:[%s957_s29 + $0x20] sm:$0xff]  ;;  %v271_v20 = vld [vmem:[%s957_s29 + $0x28] sm:$0xff]  ;;  %p745_p13 = pnand %p744_p12, %p910_p4  ;;  %p749_p2 = scmp.lt.s32.totalorder %s747_s9, %s743_s21 }
  0x1c   : > { %v293_v14 = vmul.f32 %v268_v8, %v268_v8  ;;  %v294_v18 = vmul.f32 %v269_v9, %v269_v9  ;;  %v295_v23 = vmul.f32 %v270_v15, %v270_v15  ;;  %v272_v25 = vld [vmem:[%s957_s29 + $0x30] sm:$0xff]  ;;  %v296_v28 = vmul.f32 %v271_v20, %v271_v20  ;;  %v273_v30 = vld [vmem:[%s957_s29 + $0x38] sm:$0xff]  ;;  %628 = vmatpush.xpose.msk.msra.mxu2 %vm391_vm0, %v931_v1  ;;  %v318_v49 = vld [vmem:[%s1157_s3 + $0x8] sm:$0xff]  ;;  %s1093_s29 = sshll.u32 %s243_s27, 4  ;;  %s509_s29 = int_to_ptr.vmem [resolvable:$true] %s1093_s29 }
  0x1d   : > { %337 = vmatpush.msra.mxu0 %v945_v4  ;;  %359 = vmatpush.msra.mxu1 %v945_v4  ;;  %v276_v16 = vadd.f32 %v275_v10, %v268_v8  ;;  %v299_v19 = vadd.f32 %v292_v12, %v291_v11  ;;  %v297_v33 = vmul.f32 %v272_v25, %v272_v25  ;;  %v320_v43 = vld [vmem:[%s1157_s3 + $0x18] sm:$0xff]  ;;  %v319_v46 = vld [vmem:[%s1157_s3 + $0x10] sm:$0xff]  ;;  %v317_v52 = vld [vmem:[%s1157_s3] sm:$0xff]  ;;  %p746_p0 = pneg %p745_p13  ;;  %p750_p3 = por %p749_p2, %p748_p1 }
  0x1e   : > { %v298_v37 = vmul.f32 %v273_v30, %v273_v30  ;;  %645 = vmatpush.xpose.msk.msra.mxu3 %vm391_vm0, %v931_v1  ;;  %v274_v55 = vld [vmem:[#allocation2] sm:$0x1] }
  0x1f   : > { %338 = vmatpush.msra.mxu0 %v952_v5  ;;  %360 = vmatpush.msra.mxu1 %v952_v5  ;;  %v277_v21 = vadd.f32 %v276_v16, %v269_v9  ;;  %v300_v24 = vadd.f32 %v299_v19, %v293_v14  ;;  %v290_v60 = vld [vmem:[#allocation3] sm:$0x1]  ;;  %v486_v16 = vld [vmem:[%s1155_s1] sm:$0x1]  ;;  %p751_p5 = pnand %p750_p3, %p746_p0 }
  0x20   : > { %629 = vmatpush.xpose.msk.msra.mxu2 %vm391_vm0, %v937_v3 }
  0x21   : > { %339 = vmatpush.msra.mxu0 %v968_v13  ;;  %361 = vmatpush.msra.mxu1 %v968_v13  ;;  %v278_v26 = vadd.f32 %v277_v21, %v270_v15  ;;  %v301_v29 = vadd.f32 %v300_v24, %v294_v18 }
  0x22   : > { %646 = vmatpush.xpose.msk.msra.mxu3 %vm391_vm0, %v937_v3 }
  0x23   : > { %340 = vmatpush.msra.mxu0 %v976_v17  ;;  %362 = vmatpush.msra.mxu1 %v976_v17  ;;  %v279_v31 = vadd.f32 %v278_v26, %v271_v20  ;;  %v302_v34 = vadd.f32 %v301_v29, %v295_v23  ;;  %v488_v20 = vld [vmem:[%s1156_s2] sm:$0x1] }
  0x24   : > { %630 = vmatpush.xpose.msk.msra.mxu2 %vm391_vm0, %v945_v4 }
  0x25   : > { %341 = vmatpush.msra.mxu0 %v984_v22  ;;  %363 = vmatpush.msra.mxu1 %v984_v22  ;;  %v280_v35 = vadd.f32 %v279_v31, %v272_v25  ;;  %v303_v38 = vadd.f32 %v302_v34, %v296_v28 }
  0x26   : > { %647 = vmatpush.xpose.msk.msra.mxu3 %vm391_vm0, %v945_v4 }
  0x27   : > { %342 = vmatpush.msra.mxu0 %v992_v27  ;;  %364 = vmatpush.msra.mxu1 %v992_v27  ;;  %v281_v39 = vadd.f32 %v280_v35, %v273_v30  ;;  %v304_v41 = vadd.f32 %v303_v38, %v297_v33 }
  0x28   : > { %631 = vmatpush.xpose.msk.msra.mxu2 %vm391_vm0, %v952_v5 }
  0x29   : > { %343 = vmatpush.msra.mxu0 %v1000_v32  ;;  %365 = vmatpush.msra.mxu1 %v1000_v32  ;;  %v282_v42 = vrot.slane %v281_v39, 4  ;;  %v305_v44 = vadd.f32 %v304_v41, %v298_v37 }
  0x2a   : > { %648 = vmatpush.xpose.msk.msra.mxu3 %vm391_vm0, %v952_v5 }
  0x2b   : > { %344 = vmatpush.msra.mxu0 %v1009_v36  ;;  %366 = vmatpush.msra.mxu1 %v1009_v36  ;;  %v283_v45 = vadd.f32 %v282_v42, %v281_v39  ;;  %v306_v47 = vrot.slane %v305_v44, 4 }
  0x2c   : > { %632 = vmatpush.xpose.msk.msra.mxu2 %vm391_vm0, %v968_v13 }
  0x2d   : > { %345 = vmatpush.msra.mxu0 %v321_v40  ;;  %367 = vmatpush.msra.mxu1 %v321_v40  ;;  %v284_v48 = vrot.slane %v283_v45, 2  ;;  %v307_v50 = vadd.f32 %v306_v47, %v305_v44 }
  0x2e   : > { %649 = vmatpush.xpose.msk.msra.mxu3 %vm391_vm0, %v968_v13 }
  0x2f   : > { %346 = vmatpush.msra.mxu0 %v320_v43  ;;  %368 = vmatpush.msra.mxu1 %v320_v43  ;;  %v285_v51 = vadd.f32 %v284_v48, %v283_v45  ;;  %v308_v53 = vrot.slane %v307_v50, 2 }
  0x30   : > { %633 = vmatpush.xpose.msk.msra.mxu2 %vm391_vm0, %v976_v17 }
  0x31   : > { %347 = vmatpush.msra.mxu0 %v319_v46  ;;  %369 = vmatpush.msra.mxu1 %v319_v46  ;;  %v286_v54 = vrot.slane %v285_v51, 1  ;;  %v309_v56 = vadd.f32 %v308_v53, %v307_v50 }
  0x32   : > { %650 = vmatpush.xpose.msk.msra.mxu3 %vm391_vm0, %v976_v17 }
  0x33   : > { %348 = vmatpush.msra.mxu0 %v318_v49  ;;  %370 = vmatpush.msra.mxu1 %v318_v49  ;;  %v287_v57 = vadd.f32 %v286_v54, %v285_v51  ;;  %v310_v58 = vrot.slane %v309_v56, 1 }
  0x34   : > { %634 = vmatpush.xpose.msk.msra.mxu2 %vm391_vm0, %v984_v22 }
  0x35   : > { %349 = vmatpush.msra.mxu0 %v317_v52  ;;  %371 = vmatpush.msra.mxu1 %v317_v52  ;;  %v288_v59 = vadd.f32 %v287_v57, %v274_v55  ;;  %v311_v61 = vadd.f32 %v310_v58, %v309_v56 }
  0x36   : > { %651 = vmatpush.xpose.msk.msra.mxu3 %vm391_vm0, %v984_v22 }
  0x37   : > { %289 = vst [vmem:[#allocation2] sm:$0x1] %v288_v59  ;;  %v312_v62 = vadd.f32 %v311_v61, %v290_v60 }
  0x38   : > { %635 = vmatpush.xpose.msk.msra.mxu2 %vm391_vm0, %v992_v27 }
  0x39   : > { %313 = vst [vmem:[#allocation3] sm:$0x1] %v312_v62 }
  0x3a   : > { %652 = vmatpush.xpose.msk.msra.mxu3 %vm391_vm0, %v992_v27 }
  0x3c   : > { %636 = vmatpush.xpose.msk.msra.mxu2 %vm391_vm0, %v1000_v32 }
  0x3e   : > { %v333_v63 = vld [vmem:[#allocation2] sm:$0x1]  ;;  %653 = vmatpush.xpose.msk.msra.mxu3 %vm391_vm0, %v1000_v32 }
  0x3f   : > { %350 = vmatmul.f32.vlgmr.msra.gmra.mxu0 %v333_v63 }
  0x40   : > { %v355_v0 = vld [vmem:[#allocation3] sm:$0x1]  ;;  %637 = vmatpush.xpose.msk.msra.mxu2 %vm391_vm0, %v1009_v36 }
  0x41   : > { %372 = vmatmul.f32.vlgmr.msra.gmra.mxu1 %v355_v0 }
  0x42   : > { %654 = vmatpush.xpose.msk.msra.mxu3 %vm391_vm0, %v1009_v36 }
  0x44   : > { %638 = vmatpush.xpose.msk.msra.mxu2 %vm391_vm0, %v321_v40 }
  0x46   : > { %655 = vmatpush.xpose.msk.msra.mxu3 %vm391_vm0, %v321_v40 }
  0x48   : > { %639 = vmatpush.xpose.msk.msra.mxu2 %vm391_vm0, %v320_v43 }
  0x4a   : > { %656 = vmatpush.xpose.msk.msra.mxu3 %vm391_vm0, %v320_v43 }
  0x4c   : > { %640 = vmatpush.xpose.msk.msra.mxu2 %vm391_vm0, %v319_v46 }
  0x4e   : > { %657 = vmatpush.xpose.msk.msra.mxu3 %vm391_vm0, %v319_v46 }
  0x50   : > { %641 = vmatpush.xpose.msk.msra.mxu2 %vm391_vm0, %v318_v49 }
  0x52   : > { %658 = vmatpush.xpose.msk.msra.mxu3 %vm391_vm0, %v318_v49 }
  0x54   : > { %642 = vmatpush.xpose.msk.msra.mxu2 %vm391_vm0, %v317_v52 }
  0x56   : > { %659 = vmatpush.xpose.msk.msra.mxu3 %vm391_vm0, %v317_v52 }
  0xbc   : > { %v351_v1 = vpop.f32.mrf.mxu0 }
  0xbd   : > { %v354_v2 = vmul.f32 0.015625, %v351_v1 }
  0xbe   : > { %v373_v4 = vpop.f32.mrf.mxu1 }
  0xbf   : > { %v377_v3 = vmul.f32 %v354_v2, %v354_v2  ;;  %643 = vmatmul.msk.f32.vlgmr.msra.gmra.mxu2 %vm391_vm0, %v354_v2  ;;  %v376_v5 = vmul.f32 0.015625, %v373_v4 }
  0xc1   : > { %v378_v6 = vsub.f32 %v376_v5, %v377_v3 }
  0xc3   : > { %v379_v7 = vmax.f32 %v378_v6, 0.0 }
  0xc5   : > { %v380_v8 = vadd.f32 1e-06, %v379_v7 }
  0xc7   : > { %725 = vrsqrt.f32 %v380_v8  ;;  %vm387_vm2 = vweird.f32 %v380_v8 }
  0xcd   : > { %v726_v9 = vpop.eup %725 }
  0xce   : > { %v382_v10 = vmul.f32 %v726_v9, %v380_v8  ;;  %vm388_vm1 = vweird.f32 %v726_v9 }
  0xcf   : > { %vm389_vm3 = vmor %vm387_vm2, %vm388_vm1 }
  0xd0   : > { %v383_v11 = vmul.f32 %v726_v9, %v382_v10 }
  0xd2   : > { %v384_v12 = vmul.f32 0.5, %v383_v11 }
  0xd4   : > { %v385_v13 = vsub.f32 1.5, %v384_v12 }
  0xd6   : > { %v386_v14 = vmul.f32 %v726_v9, %v385_v13 }
  0xd8   : > { %v390_v15 = vsel %vm389_vm3, %v726_v9, %v386_v14 }
  0xd9   : > { %660 = vmatmul.msk.f32.vlgmr.msra.gmra.mxu3 %vm391_vm0, %v390_v15 }
 0x142   : > { %v460_v19 = vpop.f32.mrf.mxu2 }
 0x15c   : > { %v483_v17 = vpop.f32.mrf.mxu3 }
 0x15d   : > { %v487_v18 = vmul.f32 %v486_v16, %v483_v17 }
 0x15f   : > { %v489_v21 = vmul.f32 %v487_v18, %v460_v19  ;;  %491 = vst [vmem:[%s243_s27] sm:$0x1] %v487_v18 }
 0x160   : > { %754 = shalt.err (!%p751_p5)
}
 0x161   : > { %664 = dma.vmem_to_hbm [thread:$0]  (%p910_p4), %s509_s29, 16, %s511_s7, %s494_s17   ;;  %v490_v22 = vsub.f32 %v488_v20, %v489_v21 }
 0x162   : > { %s498_s27 = scalar_lea.sflag [#allocation7], %s1083_s14  ;;  %s769_s10 = sshra.s32 %s524_s16, 4  ;;  %s770_s10 = int_to_ptr.hbm [resolvable:$true] %s769_s10 }
 0x163   : > { %492 = vst [vmem:[%s249_s13] sm:$0x1] %v490_v22  ;;  %s771_s25 = scalar_lea.hbm %s770_s10, 1  ;;  %s775_s8 = scalar_lea.hbm %s1159_s5, 2 }
 0x164   : > { %p772_p6 = scmp.ne.s32.totalorder %s770_s10, %s771_s25  ;;  %p776_p10 = scmp.lt.s32.totalorder %s770_s10, %s1159_s5 }
 0x165   : > { %p777_p11 = scmp.lt.s32.totalorder %s775_s8, %s771_s25 }
 0x166   : > { %p773_p7 = pnand %p772_p6, %p910_p4 }
 0x167   : > { %p778_p12 = por %p777_p11, %p776_p10 }
 0x168   : > { %p774_p9 = pneg %p773_p7 }
 0x16a   : > { %p779_p13 = pnand %p778_p12, %p774_p9 }
 0x16c   : > { %782 = shalt.err (!%p779_p13)
}
 0x16d   : > { %665 = dma.vmem_to_hbm [thread:$0]  (%p910_p4), %s522_s15, 16, %s524_s16, %s498_s27  }
 0x16e PF: > { %p675_p0 = scmp.ge.s32.totalorder %s837_s23, 2  ;;  %s535_s14 = sand.u32 1, %s817_s18  }
 0x16f   : > { %s536_s29 = scalar_lea.sflag [#allocation5], %s535_s14 }
 0x170   : > { %p669_p1 = pnand %p675_p0, %p917_p8 }
 0x172   : > { %p670_p2 = pneg %p669_p1 }
 0x174   : > { %808 = dma.done.wait (%p670_p2), %s536_s29, 16  }
 0x175   : > { %810 = vsyncadd (%p670_p2), %s536_s29, 4294967280  ;;  %s545_s7 = scalar_lea.sflag [#allocation7], %s535_s14 }
 0x176   : > { %812 = dma.done.wait (%p670_p2), %s545_s7, 16  }
 0x177   : > { %814 = vsyncadd (%p670_p2), %s545_s7, 4294967280  ;;  %s22_s23 = sadd.s32 1, %s837_s23   ;;  %s1162_s18 = smov %s821_s19 }
 0x178   : > { %p19_p3 = scmp.ge.s32.totalorder %s22_s23, 4   ;;  %s1163_s19 = smov %s825_s20 }
 0x179   : > { %s1164_s20 = smov %s923_s6  ;;  %s1165_s21 = smov %s833_s22 }
 0x17a   : > { %s1166_s22 = smov %s1168_s26  ;;  %21 = sbr.rel (!%p19_p3) target bundleno = 6 (0x6), region = 96 }
 0x17f   :  { %550 = vsyncpa [#allocation5], 1 }
 0x180   :  { %552 = vsyncpa [#allocation5 + $0x1], 1 }
 0x181   :  { %553 = vsyncpa [#allocation7], 1 }
 0x182   :  { %555 = vsyncpa [#allocation7 + $0x1], 1 }

</bundles_post_ra>
